<compile_context>
chip_gen: v7x
topology: tpu7x:2x2x1
jax: 0.10.0
libtpu: 0.0.40
codegen_flags: <defaults>
</compile_context>

<pallas_src>
import jax
import jax.numpy as jnp
from jax.experimental import pallas as pl
from jax.experimental.pallas import tpu as pltpu


def _round_up(n, m):
    return (n + m - 1) // m * m


def _cdiv(a, b):
    return (a + b - 1) // b


_MASK_LOGIT = -1e30  # f32-safe masked logit: exp(-1e30 - m) underflows to exactly 0


# ---------------------------------------------------------------------------
# Kernel
# ---------------------------------------------------------------------------
def _make_kernel(n_layers):
    """Kernel over refs = [x_ref, w1, b1, w2, b2, ..., wL, bL, out_ref]."""

    def kernel(*refs):
        x_ref, out_ref = refs[0], refs[-1]
        wb = refs[1:-1]

        h = x_ref[...]                                   # bf16 activations [tb, in_p]
        logits = None
        for i in range(n_layers):
            w = wb[2 * i][...]                           # bf16 [in_p, out_p] (zero-padded)
            b = wb[2 * i + 1][...]                       # f32  [1, out_p]  -> broadcasts
            # bf16 x bf16 on the MXU with f32 accumulation.
            z = jnp.dot(h, w, preferred_element_type=jnp.float32) + b
            if i < n_layers - 1:
                h = jnp.maximum(z, 0.0).astype(w.dtype)  # ReLU, back to bf16 for next dot
            else:
                logits = z                               # padded cols are -1e30 via bias

        # Numerically stable softmax.  Padded columns carry -1e30 logits so
        # exp(-1e30 - m) == 0 exactly; no explicit lane mask needed.
        # Exact divide (not approx reciprocal) so rows sum to 1.
        m = jnp.max(logits, axis=-1, keepdims=True)
        e = jnp.exp(logits - m)
        denom = jnp.sum(e, axis=-1, keepdims=True)
        out_ref[...] = (e / denom).astype(out_ref.dtype)

    return kernel


# ---------------------------------------------------------------------------
# Host-side parameter handling
# ---------------------------------------------------------------------------
def init_params(key, layers):
    """Mimic torch.nn.Linear default init: U[-1/sqrt(fan_in), +1/sqrt(fan_in)]."""
    params = []
    for i in range(len(layers) - 1):
        fan_in, fan_out = layers[i], layers[i + 1]
        key, kw, kb = jax.random.split(key, 3)
        bound = 1.0 / jnp.sqrt(jnp.float32(fan_in))
        w = jax.random.uniform(kw, (fan_in, fan_out), jnp.float32, -bound, bound)
        b = jax.random.uniform(kb, (fan_out,), jnp.float32, -bound, bound)
        params.append((w, b))
    return params


def pad_params(params, use_bf16=True):
    """Zero-pad weights/biases to 128-multiples; weights in bf16.

    The LAST layer's padded bias columns are filled with -1e30 so the padded
    logits are masked out of the softmax with no extra work in the kernel.
    """
    padded = []
    n_layers = len(params)
    for li, (w, b) in enumerate(params):
        d_in, d_out = w.shape
        dip, dop = _round_up(d_in, 128), _round_up(d_out, 128)
        wp = jnp.zeros((dip, dop), jnp.float32).at[:d_in, :d_out].set(w)
        if use_bf16:
            wp = wp.astype(jnp.bfloat16)
        if li == n_layers - 1:
            bp = jnp.full((1, dop), jnp.float32(_MASK_LOGIT))
        else:
            bp = jnp.zeros((1, dop), jnp.float32)
        bp = bp.at[0, :d_out].set(b)
        padded.append((wp, bp))
    return padded


# ---------------------------------------------------------------------------
# pallas_call wrapper
# ---------------------------------------------------------------------------
def dqn_forward(x, padded_params, n_outputs, *, tile_b=1024):
    """Forward pass of DQN_variable. Returns softmax probs [batch, n_outputs]."""
    batch, n_in = x.shape
    n_in_p = padded_params[0][0].shape[0]
    n_out_p = padded_params[-1][0].shape[1]
    n_layers = len(padded_params)

    # ----- derive the batch tile from a VMEM budget -------------------------
    weight_bytes = sum(w.size * w.dtype.itemsize + b.size * b.dtype.itemsize
                       for w, b in padded_params)
    widest = max([n_in_p, n_out_p] + [w.shape[1] for w, _ in padded_params])
    # Per-row VMEM: double-buffered bf16 input + f32 output tiles, plus room
    # for intermediate activations (budgeted as 2 * widest f32 rows).
    per_row = 2 * (n_in_p * 2 + n_out_p * 4) + 2 * widest * 4
    budget = 24 << 20                     # conservative across v5e / v6e / v7x
    avail = max(budget - 2 * weight_bytes, 1 << 20)
    tb_cap = max(16, (avail // per_row) // 16 * 16)
    tile_b = max(16, min(_round_up(tile_b, 16), tb_cap))

    b16 = _round_up(batch, 16)
    # Enough tiles to respect tile_b, and >=2 whenever the batch allows so the
    # "parallel" batch axis can shard across both v7x TensorCores.  Choosing the
    # tile count first (instead of round_up(batch, tile_b)) also avoids padding
    # the batch by nearly a full tile.
    n_tiles = max(_cdiv(b16, tile_b), 2 if b16 >= 32 else 1)
    tb = _round_up(_cdiv(b16, n_tiles), 16)
    batch_p = _round_up(batch, tb)
    grid = (batch_p // tb,)

    # Pad input: features -> 128 multiple, batch -> tile multiple, dtype bf16
    # (halves activation DMA bytes; matches the reference's pre-matmul cast).
    xp = jnp.zeros((batch_p, n_in_p), jnp.bfloat16)
    xp = xp.at[:batch, :n_in].set(x.astype(jnp.bfloat16))

    flat_params = []
    for w, b in padded_params:
        flat_params += [w, b]

    in_specs = [pl.BlockSpec((tb, n_in_p), lambda i: (i, 0))]
    for w, b in padded_params:
        # Full-array blocks, constant index maps -> VMEM-resident across grid.
        in_specs.append(pl.BlockSpec(w.shape, lambda i: (0, 0)))
        in_specs.append(pl.BlockSpec(b.shape, lambda i: (0, 0)))
    out_spec = pl.BlockSpec((tb, n_out_p), lambda i: (i, 0))

    # Scoped-VMEM limit sized from what we actually use (+ headroom).
    vmem_needed = (2 * weight_bytes
                   + 2 * tb * (n_in_p * 2 + n_out_p * 4)
                   + 2 * tb * widest * 4
                   + (4 << 20))
    vmem_limit = int(min(max(vmem_needed, 16 << 20), 100 << 20))

    # Advisory cost estimate for XLA scheduling.
    dims = [n_in_p] + [w.shape[1] for w, _ in padded_params]
    flops = 2 * batch_p * sum(dims[i] * dims[i + 1] for i in range(n_layers))
    bytes_accessed = (xp.size * xp.dtype.itemsize
                      + sum(p.size * p.dtype.itemsize for p in flat_params)
                      + batch_p * n_out_p * 4)
    transcendentals = batch_p * n_out_p  # exp per logit

    kernel = _make_kernel(n_layers)

    out_padded = pl.pallas_call(
        kernel,
        out_shape=jax.ShapeDtypeStruct((batch_p, n_out_p), jnp.float32),
        grid=grid,
        in_specs=in_specs,
        out_specs=out_spec,
        compiler_params=pltpu.CompilerParams(
            dimension_semantics=("parallel",),
            vmem_limit_bytes=vmem_limit),
        cost_estimate=pl.CostEstimate(
            flops=flops,
            transcendentals=transcendentals,
            bytes_accessed=bytes_accessed),
    )(xp, *flat_params)

    return out_padded[:batch, :n_outputs]


dqn_forward_jit = jax.jit(
    dqn_forward, static_argnums=(2,), static_argnames=("tile_b",))


# ---------------------------------------------------------------------------
# Plain-JAX reference (same bf16-operand / f32-accumulate numerics)
# ---------------------------------------------------------------------------
def reference_forward(x, params):
    h = x.astype(jnp.float32)
    n_layers = len(params)
    for i, (w, b) in enumerate(params):
        h = jnp.dot(h.astype(jnp.bfloat16), w.astype(jnp.bfloat16),
                    preferred_element_type=jnp.float32) + b
        if i < n_layers - 1:
            h = jnp.maximum(h, 0.0)
    return jax.nn.softmax(h, axis=1)


# ---------------------------------------------------------------------------
if __name__ == "__main__":
    # Small DQN_variable: layers = [n_inputs, hidden, hidden, n_outputs]
    layers = [16, 32, 32, 4]
    batch = 8

    key = jax.random.PRNGKey(0)
    key, kx = jax.random.split(key)
    x = jax.random.normal(kx, (batch, layers[0]), jnp.float32)

    params = init_params(key, layers)
    padded_params = pad_params(params, use_bf16=True)

    out = dqn_forward_jit(x, padded_params, layers[-1])
    out = jax.block_until_ready(out)

    ref = reference_forward(x, params)

    assert out.shape == (batch, layers[-1])
    assert bool(jnp.all(jnp.isfinite(out)))
    # Exact softmax divide -> rows sum to 1 within f32 rounding.
    assert jnp.allclose(jnp.sum(out, axis=1), jnp.ones((batch,)), atol=1e-3)
    err = jnp.max(jnp.abs(out - ref))
    assert jnp.allclose(out, ref, atol=2e-3, rtol=2e-3), f"max abs err {err}"

    print("KERNEL_OK")
</pallas_src>

<mosaic_0001>
module attributes {stable_mosaic.version = 11 : i64} {
  func.func @kernel(%arg0: i32, %arg1: memref<16x128xbf16, #tpu.memory_space<vmem>>, %arg2: memref<128x128xbf16, #tpu.memory_space<vmem>>, %arg3: memref<1x128xf32, #tpu.memory_space<vmem>>, %arg4: memref<128x128xbf16, #tpu.memory_space<vmem>>, %arg5: memref<1x128xf32, #tpu.memory_space<vmem>>, %arg6: memref<128x128xbf16, #tpu.memory_space<vmem>>, %arg7: memref<1x128xf32, #tpu.memory_space<vmem>>, %arg8: memref<16x128xf32, #tpu.memory_space<vmem>>) attributes {dimension_semantics = [#tpu.dimension_semantics<parallel>], iteration_bounds = array<i64: 1>, scalar_prefetch = 0 : i64, scratch_operands = 0 : i64, tpu.core_type = #tpu.core_type<tc>, window_params = [{transform_indices = @transform_0, window_bounds = array<i64: 16, 128>}, {pipeline_mode = #tpu.pipeline_mode<synchronous>, transform_indices = @transform_1, window_bounds = array<i64: 128, 128>}, {pipeline_mode = #tpu.pipeline_mode<synchronous>, transform_indices = @transform_2, window_bounds = array<i64: 1, 128>}, {pipeline_mode = #tpu.pipeline_mode<synchronous>, transform_indices = @transform_3, window_bounds = array<i64: 128, 128>}, {pipeline_mode = #tpu.pipeline_mode<synchronous>, transform_indices = @transform_4, window_bounds = array<i64: 1, 128>}, {pipeline_mode = #tpu.pipeline_mode<synchronous>, transform_indices = @transform_5, window_bounds = array<i64: 128, 128>}, {pipeline_mode = #tpu.pipeline_mode<synchronous>, transform_indices = @transform_6, window_bounds = array<i64: 1, 128>}, {transform_indices = @transform_7, window_bounds = array<i64: 16, 128>}]} {
    %c0 = arith.constant 0 : index
    %c0_0 = arith.constant 0 : index
    %0 = vector.load %arg1[%c0, %c0_0] : memref<16x128xbf16, #tpu.memory_space<vmem>>, vector<16x128xbf16>
    %c0_1 = arith.constant 0 : index
    %c0_2 = arith.constant 0 : index
    %1 = vector.load %arg2[%c0_1, %c0_2] : memref<128x128xbf16, #tpu.memory_space<vmem>>, vector<128x128xbf16>
    %c0_3 = arith.constant 0 : index
    %c0_4 = arith.constant 0 : index
    %2 = vector.load %arg3[%c0_3, %c0_4] : memref<1x128xf32, #tpu.memory_space<vmem>>, vector<1x128xf32>
    %cst = arith.constant dense<0.000000e+00> : vector<16x128xf32>
    %3 = tpu.matmul %0, %1, %cst {dimension_numbers = #tpu.dot_dimension_numbers<[1], [0], [0], [1], [0, 0, 1, 1], [], []>} : vector<16x128xbf16>, vector<128x128xbf16>, vector<16x128xf32> -> vector<16x128xf32>
    %4 = vector.broadcast %2 : vector<1x128xf32> to vector<16x128xf32>
    %5 = arith.addf %3, %4 : vector<16x128xf32>
    %cst_5 = arith.constant 0.000000e+00 : f32
    %6 = vector.broadcast %cst_5 : f32 to vector<16x128xf32>
    %7 = arith.maximumf %5, %6 : vector<16x128xf32>
    %8 = arith.truncf %7 : vector<16x128xf32> to vector<16x128xbf16>
    %c0_6 = arith.constant 0 : index
    %c0_7 = arith.constant 0 : index
    %9 = vector.load %arg4[%c0_6, %c0_7] : memref<128x128xbf16, #tpu.memory_space<vmem>>, vector<128x128xbf16>
    %c0_8 = arith.constant 0 : index
    %c0_9 = arith.constant 0 : index
    %10 = vector.load %arg5[%c0_8, %c0_9] : memref<1x128xf32, #tpu.memory_space<vmem>>, vector<1x128xf32>
    %cst_10 = arith.constant dense<0.000000e+00> : vector<16x128xf32>
    %11 = tpu.matmul %8, %9, %cst_10 {dimension_numbers = #tpu.dot_dimension_numbers<[1], [0], [0], [1], [0, 0, 1, 1], [], []>} : vector<16x128xbf16>, vector<128x128xbf16>, vector<16x128xf32> -> vector<16x128xf32>
    %12 = vector.broadcast %10 : vector<1x128xf32> to vector<16x128xf32>
    %13 = arith.addf %11, %12 : vector<16x128xf32>
    %cst_11 = arith.constant 0.000000e+00 : f32
    %14 = vector.broadcast %cst_11 : f32 to vector<16x128xf32>
    %15 = arith.maximumf %13, %14 : vector<16x128xf32>
    %16 = arith.truncf %15 : vector<16x128xf32> to vector<16x128xbf16>
    %c0_12 = arith.constant 0 : index
    %c0_13 = arith.constant 0 : index
    %17 = vector.load %arg6[%c0_12, %c0_13] : memref<128x128xbf16, #tpu.memory_space<vmem>>, vector<128x128xbf16>
    %c0_14 = arith.constant 0 : index
    %c0_15 = arith.constant 0 : index
    %18 = vector.load %arg7[%c0_14, %c0_15] : memref<1x128xf32, #tpu.memory_space<vmem>>, vector<1x128xf32>
    %cst_16 = arith.constant dense<0.000000e+00> : vector<16x128xf32>
    %19 = tpu.matmul %16, %17, %cst_16 {dimension_numbers = #tpu.dot_dimension_numbers<[1], [0], [0], [1], [0, 0, 1, 1], [], []>} : vector<16x128xbf16>, vector<128x128xbf16>, vector<16x128xf32> -> vector<16x128xf32>
    %20 = vector.broadcast %18 : vector<1x128xf32> to vector<16x128xf32>
    %21 = arith.addf %19, %20 : vector<16x128xf32>
    %cst_17 = arith.constant dense<0xFF800000> : vector<16xf32>
    %22 = vector.multi_reduction <maximumf>, %21, %cst_17 [1] : vector<16x128xf32> to vector<16xf32>
    %23 = vector.shape_cast %22 : vector<16xf32> to vector<16x1xf32>
    %24 = vector.broadcast %23 : vector<16x1xf32> to vector<16x128xf32>
    %25 = arith.subf %21, %24 : vector<16x128xf32>
    %26 = math.exp %25 : vector<16x128xf32>
    %cst_18 = arith.constant dense<0.000000e+00> : vector<16xf32>
    %27 = vector.multi_reduction <add>, %26, %cst_18 [1] : vector<16x128xf32> to vector<16xf32>
    %28 = vector.shape_cast %27 : vector<16xf32> to vector<16x1xf32>
    %29 = vector.broadcast %28 : vector<16x1xf32> to vector<16x128xf32>
    %30 = arith.divf %26, %29 : vector<16x128xf32>
    %c0_19 = arith.constant 0 : index
    %c0_20 = arith.constant 0 : index
    %31 = vector.load %arg8[%c0_19, %c0_20] : memref<16x128xf32, #tpu.memory_space<vmem>>, vector<16x128xf32>
    tpu.vector_store %arg8[%c0_19, %c0_20], %30 {strides = array<i32>} : memref<16x128xf32, #tpu.memory_space<vmem>>, vector<16x128xf32>,
    return
  }
  func.func @transform_0(%arg0: i32) -> (i32, i32) {
    %c0_i32 = arith.constant 0 : i32
    %c0_i32_0 = arith.constant 0 : i32
    return %arg0, %c0_i32 : i32, i32
  }
  func.func @transform_1(%arg0: i32) -> (i32, i32) {
    %c0_i32 = arith.constant 0 : i32
    %c0_i32_0 = arith.constant 0 : i32
    %c0_i32_1 = arith.constant 0 : i32
    return %c0_i32, %c0_i32_0 : i32, i32
  }
  func.func @transform_2(%arg0: i32) -> (i32, i32) {
    %c0_i32 = arith.constant 0 : i32
    %c0_i32_0 = arith.constant 0 : i32
    %c0_i32_1 = arith.constant 0 : i32
    return %c0_i32, %c0_i32_0 : i32, i32
  }
  func.func @transform_3(%arg0: i32) -> (i32, i32) {
    %c0_i32 = arith.constant 0 : i32
    %c0_i32_0 = arith.constant 0 : i32
    %c0_i32_1 = arith.constant 0 : i32
    return %c0_i32, %c0_i32_0 : i32, i32
  }
  func.func @transform_4(%arg0: i32) -> (i32, i32) {
    %c0_i32 = arith.constant 0 : i32
    %c0_i32_0 = arith.constant 0 : i32
    %c0_i32_1 = arith.constant 0 : i32
    return %c0_i32, %c0_i32_0 : i32, i32
  }
  func.func @transform_5(%arg0: i32) -> (i32, i32) {
    %c0_i32 = arith.constant 0 : i32
    %c0_i32_0 = arith.constant 0 : i32
    %c0_i32_1 = arith.constant 0 : i32
    return %c0_i32, %c0_i32_0 : i32, i32
  }
  func.func @transform_6(%arg0: i32) -> (i32, i32) {
    %c0_i32 = arith.constant 0 : i32
    %c0_i32_0 = arith.constant 0 : i32
    %c0_i32_1 = arith.constant 0 : i32
    return %c0_i32, %c0_i32_0 : i32, i32
  }
  func.func @transform_7(%arg0: i32) -> (i32, i32) {
    %c0_i32 = arith.constant 0 : i32
    %c0_i32_0 = arith.constant 0 : i32
    return %arg0, %c0_i32 : i32, i32
  }
}

</mosaic_0001>

<bundles_post_ra>
// kernel: dqn_forward.1
= control target key start
LH: loop header
LB: loop body
LE: loop exit
PB: predicated region body
PF: predicated region fallthrough
CT: control target
= control target key end

     0   :  { %12 = vsyncpa [#allocation3], 0  ;;  %s816_s0 = inlined_call_operand.vmem [shape: bf16[16,128], index: 0, kind: input, shape index: {}]   ;;  %s817_s1 = inlined_call_operand.hbm [shape: bf16[128,128], index: 1, kind: input, shape index: {}]   ;;  %s818_s2 = inlined_call_operand.vmem [shape: f32[1,128], index: 2, kind: input, shape index: {}]   ;;  %s819_s3 = inlined_call_operand.hbm [shape: bf16[128,128], index: 3, kind: input, shape index: {}]   ;;  %s820_s4 = inlined_call_operand.vmem [shape: f32[1,128], index: 4, kind: input, shape index: {}]   ;;  %s821_s5 = inlined_call_operand.hbm [shape: bf16[128,128], index: 5, kind: input, shape index: {}]   ;;  %s822_s6 = inlined_call_operand.vmem [shape: f32[1,128], index: 6, kind: input, shape index: {}]   ;;  %s823_s7 = inlined_call_operand.vmem [shape: f32[16,128], index: 7, kind: output, shape index: {}]  }
   0x1   :  { %13 = vsyncpa [#allocation5], 0  ;;  %s669_s24 = smov [#allocation4]   ;;  %s670_s26 = smov [#allocation2]  }
   0x2   :  { %s35_s25 = sshll.u32 %s669_s24, 4  ;;  %s21_s27 = sshll.u32 %s670_s26, 4  ;;  %s36_s25 = int_to_ptr.vmem [resolvable:$true] %s35_s25  ;;  %s716_s27 = int_to_ptr.vmem [resolvable:$true] %s21_s27 }
   0x3   :  { %s599_s30 = scalar_lea.hbm %s819_s3, 1024 }
   0x4   :  { %p600_p0 = scmp.ne.s32.totalorder %s819_s3, %s599_s30  ;;  %p603_p1 = scmp.lt.u32.totalorder %s599_s30, %s819_s3 }
   0x6   :  { %p605_p2 = pnand %p603_p1, %p600_p0 }
   0x8   :  { %608 = shalt.err (!%p605_p2)
}
   0x9   :  { %s609_s12 = scalar_lea.vmem %s36_s25, 1024  ;;  %p614_p4 = scmp.lt.s32.totalorder %s36_s25, %s36_s25 }
   0xa   :  { %p610_p3 = scmp.ne.s32.totalorder %s36_s25, %s609_s12  ;;  %p615_p5 = scmp.lt.s32.totalorder %s609_s12, %s609_s12 }
   0xc   :  { %p616_p6 = por %p615_p5, %p614_p4 }
   0xe   :  { %p617_p7 = pnand %p616_p6, %p610_p3 }
  0x10   :  { %620 = shalt.err (!%p617_p7)
}
  0x11   :  { %s671_s13 = smov 64   ;;  %s672_s14 = smov 4  }
  0x12   :  { %41 = dma.hbm_to_vmem [thread:$0]  %s819_s3, 1024, %s36_s25, [#allocation5], %s671_s13, %s671_s13, %s672_s14  }
  0x13   :  { %s621_s19 = scalar_lea.hbm %s817_s1, 1024 }
  0x14   :  { %p622_p8 = scmp.ne.s32.totalorder %s817_s1, %s621_s19  ;;  %p625_p9 = scmp.lt.u32.totalorder %s621_s19, %s817_s1 }
  0x16   :  { %p627_p10 = pnand %p625_p9, %p622_p8 }
  0x18   :  { %630 = shalt.err (!%p627_p10)
}
  0x19   :  { %s631_s24 = scalar_lea.vmem %s716_s27, 1024  ;;  %p636_p12 = scmp.lt.s32.totalorder %s716_s27, %s716_s27 }
  0x1a   :  { %p632_p11 = scmp.ne.s32.totalorder %s716_s27, %s631_s24  ;;  %p637_p13 = scmp.lt.s32.totalorder %s631_s24, %s631_s24 }
  0x1c   :  { %p638_p0 = por %p637_p13, %p636_p12 }
  0x1e   :  { %p639_p1 = pnand %p638_p0, %p632_p11 }
  0x20   :  { %642 = shalt.err (!%p639_p1)
}
  0x21   :  { %27 = dma.hbm_to_vmem [thread:$0]  %s817_s1, 1024, %s716_s27, [#allocation3], %s671_s13, %s671_s13, %s672_s14  }
  0x22   :  { %s673_s26 = smov [#allocation6]   ;;  %s643_s8 = scalar_lea.hbm %s821_s5, 1024 }
  0x23   :  { %s49_s28 = sshll.u32 %s673_s26, 4  ;;  %p644_p2 = scmp.ne.s32.totalorder %s821_s5, %s643_s8  ;;  %s50_s28 = int_to_ptr.vmem [resolvable:$true] %s49_s28 }
  0x24   :  { %p647_p3 = scmp.lt.u32.totalorder %s643_s8, %s821_s5 }
  0x26   :  { %p649_p4 = pnand %p647_p3, %p644_p2 }
  0x28   :  { %652 = shalt.err (!%p649_p4)
}
  0x29   :  { %s653_s15 = scalar_lea.vmem %s50_s28, 1024  ;;  %p658_p6 = scmp.lt.s32.totalorder %s50_s28, %s50_s28 }
  0x2a   :  { %p654_p5 = scmp.ne.s32.totalorder %s50_s28, %s653_s15  ;;  %p659_p7 = scmp.lt.s32.totalorder %s653_s15, %s653_s15 }
  0x2c   :  { %p660_p8 = por %p659_p7, %p658_p6 }
  0x2e   :  { %p661_p9 = pnand %p660_p8, %p654_p5 }
  0x30   :  { %664 = shalt.err (!%p661_p9)
}
  0x31   :  { %55 = dma.hbm_to_vmem [thread:$0]  %s821_s5, 1024, %s50_s28, [#allocation5], %s671_s13, %s671_s13, %s672_s14  }
  0x32   :  { %665 = dma.done.wait [#allocation3], 1024  }
  0x33   :  { %666 = vsyncadd [#allocation3], 4294966272 }
  0x34   :  { %667 = dma.done.wait [#allocation5], 2048  }
  0x35   :  { %668 = vsyncadd [#allocation5], 4294965248  ;;  %v674_v0 = vmov 0.0   ;;  %vm675_vm0 = vmmov 0   ;;  %v566_v1 = vld [vmem:[#allocation2] sm:$0xff]   ;;  %v567_v2 = vld [vmem:[#allocation2 + $0x8] sm:$0xff]  }
  0x36   :  { %499 = vmatprep.subr.bf16.mxu0 %v674_v0  ;;  %515 = vmatprep.mubr.msk.bf16.mxu0 %vm675_vm0, %v674_v0  ;;  %v568_v3 = vld [vmem:[#allocation2 + $0x10] sm:$0xff]   ;;  %v575_v4 = vld [vmem:[#allocation4] sm:$0xff]   ;;  %v569_v5 = vld [vmem:[#allocation2 + $0x18] sm:$0xff]  }
  0x37   :  { %519 = vmatprep.subr.bf16.mxu1 %v674_v0  ;;  %535 = vmatprep.mubr.msk.bf16.mxu1 %vm675_vm0, %v674_v0  ;;  %v576_v6 = vld [vmem:[#allocation4 + $0x8] sm:$0xff]   ;;  %v570_v7 = vld [vmem:[#allocation2 + $0x20] sm:$0xff]   ;;  %v577_v8 = vld [vmem:[#allocation4 + $0x10] sm:$0xff]  }
  0x38   :  { %500 = vmatpush3.bf16.msra.mxu0 %v566_v1  ;;  %520 = vmatpush3.bf16.msra.mxu1 %v575_v4  ;;  %v571_v9 = vld [vmem:[#allocation2 + $0x28] sm:$0xff]   ;;  %v578_v10 = vld [vmem:[#allocation4 + $0x18] sm:$0xff]   ;;  %v572_v11 = vld [vmem:[#allocation2 + $0x30] sm:$0xff]  }
  0x39   :  { %501 = vmatprep.subr.bf16.mxu0 %v674_v0  ;;  %521 = vmatprep.subr.bf16.mxu1 %v674_v0  ;;  %v579_v12 = vld [vmem:[#allocation4 + $0x20] sm:$0xff]   ;;  %v573_v13 = vld [vmem:[#allocation2 + $0x38] sm:$0xff]   ;;  %v580_v14 = vld [vmem:[#allocation4 + $0x28] sm:$0xff]  }
  0x3a   :  { %v574_v15 = vld [vmem:[%s816_s0] sm:$0xff]   ;;  %v581_v16 = vld [vmem:[#allocation4 + $0x30] sm:$0xff]   ;;  %v582_v17 = vld [vmem:[#allocation4 + $0x38] sm:$0xff]  }
  0x3b   :  { %v583_v18 = vld [vmem:[#allocation6] sm:$0xff]   ;;  %v584_v19 = vld [vmem:[#allocation6 + $0x8] sm:$0xff]   ;;  %v585_v20 = vld [vmem:[#allocation6 + $0x10] sm:$0xff]  }
  0x3c   :  { %502 = vmatpush3.bf16.msra.mxu0 %v567_v2  ;;  %522 = vmatpush3.bf16.msra.mxu1 %v576_v6  ;;  %v586_v21 = vld [vmem:[#allocation6 + $0x18] sm:$0xff]   ;;  %v587_v22 = vld [vmem:[#allocation6 + $0x20] sm:$0xff]   ;;  %v588_v23 = vld [vmem:[#allocation6 + $0x28] sm:$0xff]  }
  0x3d   :  { %503 = vmatprep.subr.bf16.mxu0 %v674_v0  ;;  %523 = vmatprep.subr.bf16.mxu1 %v674_v0  ;;  %v444_v24 = vld [vmem:[%s818_s2] ss:$0 sm:$0xff]  ;;  %v589_v34 = vld [vmem:[#allocation6 + $0x30] sm:$0xff]   ;;  %v590_v35 = vld [vmem:[#allocation6 + $0x38] sm:$0xff]  }
  0x3e   :  { %v454_v36 = vld [vmem:[%s820_s4] ss:$0 sm:$0xff] }
  0x3f   :  { %v463_v46 = vld [vmem:[%s822_s6] ss:$0 sm:$0xff] }
  0x40   :  { %504 = vmatpush3.bf16.msra.mxu0 %v568_v3  ;;  %524 = vmatpush3.bf16.msra.mxu1 %v577_v8 }
  0x41   :  { %505 = vmatprep.subr.bf16.mxu0 %v674_v0  ;;  %525 = vmatprep.subr.bf16.mxu1 %v674_v0 }
  0x44   :  { %506 = vmatpush3.bf16.msra.mxu0 %v569_v5  ;;  %526 = vmatpush3.bf16.msra.mxu1 %v578_v10 }
  0x45   :  { %507 = vmatprep.subr.bf16.mxu0 %v674_v0  ;;  %527 = vmatprep.subr.bf16.mxu1 %v674_v0 }
  0x48   :  { %508 = vmatpush3.bf16.msra.mxu0 %v570_v7  ;;  %528 = vmatpush3.bf16.msra.mxu1 %v579_v12 }
  0x49   :  { %509 = vmatprep.subr.bf16.mxu0 %v674_v0  ;;  %529 = vmatprep.subr.bf16.mxu1 %v674_v0 }
  0x4c   :  { %510 = vmatpush3.bf16.msra.mxu0 %v571_v9  ;;  %530 = vmatpush3.bf16.msra.mxu1 %v580_v14 }
  0x4d   :  { %511 = vmatprep.subr.bf16.mxu0 %v674_v0  ;;  %531 = vmatprep.subr.bf16.mxu1 %v674_v0 }
  0x50   :  { %512 = vmatpush3.bf16.msra.mxu0 %v572_v11  ;;  %532 = vmatpush3.bf16.msra.mxu1 %v581_v16 }
  0x51   :  { %513 = vmatprep.subr.bf16.mxu0 %v674_v0  ;;  %533 = vmatprep.subr.bf16.mxu1 %v674_v0 }
  0x54   :  { %514 = vmatpush3.bf16.msra.mxu0 %v573_v13  ;;  %534 = vmatpush3.bf16.msra.mxu1 %v582_v17 }
  0x55   :  { %539 = vmatprep.subr.bf16.mxu0 %v674_v0 }
  0x57   :  { %516 = vmatmul.mubr.bf16.vlgmr.msra.gmra.mrb[0].mxu0 %v574_v15 }
  0x58   :  { %555 = vmatprep.mubr.msk.bf16.mxu0 %vm675_vm0, %v674_v0  ;;  %540 = vmatpush3.bf16.msra.mxu0 %v583_v18 }
  0x59   :  { %541 = vmatprep.subr.bf16.mxu0 %v674_v0 }
  0x5c   :  { %542 = vmatpush3.bf16.msra.mxu0 %v584_v19 }
  0x5d   :  { %543 = vmatprep.subr.bf16.mxu0 %v674_v0 }
  0x60   :  { %544 = vmatpush3.bf16.msra.mxu0 %v585_v20 }
  0x61   :  { %545 = vmatprep.subr.bf16.mxu0 %v674_v0 }
  0x64   :  { %546 = vmatpush3.bf16.msra.mxu0 %v586_v21 }
  0x65   :  { %547 = vmatprep.subr.bf16.mxu0 %v674_v0 }
  0x68   :  { %548 = vmatpush3.bf16.msra.mxu0 %v587_v22 }
  0x69   :  { %549 = vmatprep.subr.bf16.mxu0 %v674_v0 }
  0x6c   :  { %550 = vmatpush3.bf16.msra.mxu0 %v588_v23 }
  0x6d   :  { %551 = vmatprep.subr.bf16.mxu0 %v674_v0 }
  0x70   :  { %552 = vmatpush3.bf16.msra.mxu0 %v589_v34 }
  0x71   :  { %553 = vmatprep.subr.bf16.mxu0 %v674_v0 }
  0x74   :  { %554 = vmatpush3.bf16.msra.mxu0 %v590_v35 }
 0x12a   :  { %v181_v25 = vpop.f32.mrb[0].mxu0 }
 0x12b   :  { %v182_v26 = vadd.f32 %v444_v24, %v181_v25  ;;  %v517_v27 = vpop.f32.mrb[1].mxu0 }
 0x12c   :  { %v184_v28 = vpop.f32.mrb[2].mxu0 }
 0x12d   :  { %v185_v29 = vadd.f32 %v444_v24, %v184_v28  ;;  %v518_v30 = vpop.f32.mrb[3].mxu0  ;;  %v188_v31 = vmax.f32 %v182_v26, 0.0 }
 0x12f   :  { %v189_v32 = vmax.f32 %v185_v29, 0.0 }
 0x131   :  { %v190_v33 = vpack.c.bf16 %v189_v32, %v188_v31 }
 0x133   :  { %536 = vmatmul.mubr.bf16.vlgmr.msra.gmra.mrb[0].mxu1 %v190_v33 }
 0x206   :  { %v296_v37 = vpop.f32.mrb[0].mxu1 }
 0x207   :  { %v297_v38 = vadd.f32 %v454_v36, %v296_v37  ;;  %v537_v39 = vpop.f32.mrb[1].mxu1 }
 0x208   :  { %v299_v40 = vpop.f32.mrb[2].mxu1 }
 0x209   :  { %v300_v41 = vadd.f32 %v454_v36, %v299_v40  ;;  %v538_v42 = vpop.f32.mrb[3].mxu1  ;;  %v303_v43 = vmax.f32 %v297_v38, 0.0 }
 0x20b   :  { %v304_v44 = vmax.f32 %v300_v41, 0.0 }
 0x20d   :  { %v305_v45 = vpack.c.bf16 %v304_v44, %v303_v43 }
 0x20f   :  { %556 = vmatmul.mubr.bf16.vlgmr.msra.gmra.mrb[4].mxu0 %v305_v45 }
 0x2e2   :  { %v411_v47 = vpop.f32.mrb[4].mxu0 }
 0x2e3   :  { %v412_v48 = vadd.f32 %v463_v46, %v411_v47  ;;  %v557_v49 = vpop.f32.mrb[5].mxu0 }
 0x2e4   :  { %v414_v50 = vpop.f32.mrb[6].mxu0 }
 0x2e5   :  { %418 = vmax.xlane.f32.xlu0 %v412_v48  ;;  %v558_v51 = vpop.f32.mrb[7].mxu0  ;;  %v415_v52 = vadd.f32 %v463_v46, %v414_v50 }
 0x2e9   :  { %420 = vmax.xlane.f32.xlu0 %v415_v52 }
 0x372   :  { %v419_v53 = vpop.xlane.xlu0 %418 }
 0x373   :  { %v422_v54 = vsub.f32 %v412_v48, %v419_v53 }
 0x375   :  { %v424_v55 = vmul.f32 1.442695, %v422_v54 }
 0x376   :  { %v421_v56 = vpop.xlane.xlu0 %420 }
 0x377   :  { %591 = vpow2.f32 %v424_v55  ;;  %v423_v57 = vsub.f32 %v415_v52, %v421_v56 }
 0x379   :  { %v426_v58 = vmul.f32 1.442695, %v423_v57 }
 0x37b   :  { %593 = vpow2.f32 %v426_v58 }
 0x381   :  { %v592_v59 = vpop.eup %591 }
 0x382   :  { %428 = vadd.xlane.f32.xlu1 %v592_v59 }
 0x385   :  { %v594_v60 = vpop.eup %593 }
 0x386   :  { %430 = vadd.xlane.f32.xlu1 %v594_v60 }
 0x40f   :  { %v429_v61 = vpop.xlane.xlu1 %428 }
 0x410   :  { %595 = vrcp.f32 %v429_v61 }
 0x413   :  { %v431_v62 = vpop.xlane.xlu1 %430 }
 0x414   :  { %597 = vrcp.f32 %v431_v62 }
 0x41a   :  { %v596_v63 = vpop.eup %595 }
 0x41b   :  { %v433_v0 = vmul.f32 %v596_v63, %v592_v59 }
 0x41d   :  { %436 = vst [vmem:[%s823_s7] sm:$0xff] %v433_v0 }
 0x41e   :  { %v598_v1 = vpop.eup %597 }
 0x41f   :  { %v435_v2 = vmul.f32 %v598_v1, %v594_v60 }
 0x421   :  { %437 = vst [vmem:[%s823_s7 + $0x8] sm:$0xff] %v435_v2 }
 0x422   :  { %442 = vsyncpa [#allocation3], 1 }
 0x423   :  { %443 = vsyncpa [#allocation5], 1 }

</bundles_post_ra>
